<compile_context>
chip_gen: v6e
topology: v6e:2x2x1
jax: 0.10.0
libtpu: 0.0.40
codegen_flags: <defaults>
</compile_context>

<pallas_src>
import functools

import jax
import jax.numpy as jnp
from jax import lax
from jax.experimental import pallas as pl
from jax.experimental.pallas import tpu as pltpu


def _round_up(x, m):
    return (x + m - 1) // m * m


# ---------------------------------------------------------------------------
# Fused Pallas kernel: full encode stack + full decode stack in one body.
# Layer loop is unrolled at trace time (layer widths are static).
# ---------------------------------------------------------------------------
def _sdae_fused_kernel(*refs, num_layers):
    # refs = [x, w_0..w_{L-1}, b_enc_0..b_enc_{L-1}, b_dec_0..b_dec_{L-1},
    #         latent_out, rec_out]
    x_ref = refs[0]
    w_refs = refs[1:1 + num_layers]
    be_refs = refs[1 + num_layers:1 + 2 * num_layers]
    bd_refs = refs[1 + 2 * num_layers:1 + 3 * num_layers]
    latent_ref, rec_ref = refs[1 + 3 * num_layers:1 + 3 * num_layers + 2]

    # ---- encode: h = sigmoid(h @ W_l + b_enc_l); dropout is identity in eval ----
    h = x_ref[...].astype(jnp.float32)
    for l in range(num_layers):
        w = w_refs[l][...]                                    # bf16 (din_l, dout_l)
        z = lax.dot_general(h.astype(w.dtype), w,
                            (((1,), (0,)), ((), ())),         # (TB, dout_l), f32 acc
                            preferred_element_type=jnp.float32)
        h = jax.nn.sigmoid(z + be_refs[l][...])               # bias + sigmoid in f32
    latent_ref[...] = h.astype(latent_ref.dtype)

    # ---- decode: sigmoid (all but first step), then r = r @ W_l.T + b_dec_l ----
    # tie_weights=True: decode.weight == encode.weight.T, so decode reuses the same
    # VMEM-resident W with the contraction on its second dim (no duplicate weight).
    r = h
    for i, l in enumerate(reversed(range(num_layers))):
        if i != 0:
            r = jax.nn.sigmoid(r)
        w = w_refs[l][...]                                    # (din_l, dout_l)
        r = lax.dot_general(r.astype(w.dtype), w,
                            (((1,), (1,)), ((), ())),         # (TB, din_l), f32 acc
                            preferred_element_type=jnp.float32) + bd_refs[l][...]
    rec_ref[...] = r.astype(rec_ref.dtype)


# ---------------------------------------------------------------------------
# Wrapper: batch tiling, VMEM budget, cost estimate, one pallas_call.
# ---------------------------------------------------------------------------
def sdae_forward(params, x, *, tile_batch=256):
    B, din0 = x.shape
    L = len(params)
    widths = [din0] + [int(p["w"].shape[1]) for p in params]
    latent_dim = widths[-1]

    # Batch tile: >= 8 (f32 sublane), ideally 256; pad B up to a tile multiple.
    tb = max(8, min(_round_up(tile_batch, 8), _round_up(B, 8)))
    b_pad = _round_up(B, tb)
    x_p = jnp.pad(x, ((0, b_pad - B), (0, 0))) if b_pad != B else x

    inputs = [x_p]
    in_specs = [pl.BlockSpec((tb, din0), lambda i: (i, 0))]
    for p in params:                      # weights: grid-invariant, DMA'd once
        din, dout = p["w"].shape
        inputs.append(p["w"])
        in_specs.append(pl.BlockSpec((din, dout), lambda i: (0, 0)))
    for p in params:                      # encode biases
        inputs.append(p["b_enc"])
        in_specs.append(pl.BlockSpec((1, p["b_enc"].shape[1]), lambda i: (0, 0)))
    for p in params:                      # decode biases
        inputs.append(p["b_dec"])
        in_specs.append(pl.BlockSpec((1, p["b_dec"].shape[1]), lambda i: (0, 0)))

    out_shape = (
        jax.ShapeDtypeStruct((b_pad, latent_dim), jnp.float32),
        jax.ShapeDtypeStruct((b_pad, din0), jnp.float32),
    )
    out_specs = (
        pl.BlockSpec((tb, latent_dim), lambda i: (i, 0)),
        pl.BlockSpec((tb, din0), lambda i: (i, 0)),
    )

    # --- advisory cost estimate for XLA's scheduler ---
    flops = sum(2 * 2 * b_pad * di * do for di, do in zip(widths[:-1], widths[1:]))
    transcendentals = b_pad * (sum(widths[1:]) + sum(widths[1:-1]))
    param_bytes = sum(int(a.size) * a.dtype.itemsize
                      for p in params for a in (p["w"], p["b_enc"], p["b_dec"]))
    bytes_accessed = (int(x_p.size) * 4 + param_bytes
                      + b_pad * latent_dim * 4 + b_pad * din0 * 4)

    # --- VMEM budget: resident weights/biases + double-buffered in/out tiles +
    #     activation headroom; clamp to [16 MiB, 64 MiB] (safe on v7x, raises
    #     v5e's 16 MiB default scoped limit when needed). ---
    io_tile_bytes = 4 * tb * (din0 + latent_dim + din0)
    act_bytes = 4 * tb * 2 * max(widths)
    need = param_bytes + 2 * io_tile_bytes + act_bytes
    vmem_limit = int(min(64 * 1024 * 1024,
                         max(16 * 1024 * 1024, 2 * need + (4 << 20))))

    kernel = functools.partial(_sdae_fused_kernel, num_layers=L)
    latent, rec = pl.pallas_call(
        kernel,
        out_shape=out_shape,
        grid=(b_pad // tb,),
        in_specs=in_specs,
        out_specs=out_specs,
        compiler_params=pltpu.CompilerParams(
            dimension_semantics=("parallel",),
            vmem_limit_bytes=vmem_limit,
        ),
        cost_estimate=pl.CostEstimate(
            flops=int(flops),
            transcendentals=int(transcendentals),
            bytes_accessed=int(bytes_accessed),
        ),
    )(*inputs)
    return latent[:B], rec[:B]


# ---------------------------------------------------------------------------
# Parameter construction (mimics torch.nn.Linear init + tie_weights=True).
# Single tied weight per layer, stored once in bf16, kernel layout (din, dout).
# ---------------------------------------------------------------------------
def init_sdae_params(key, input_layer, hidden_layers, latent_layer):
    layers = [input_layer] + list(hidden_layers) + [latent_layer]
    params = []
    for din, dout in zip(layers, layers[1:]):
        key, k_w, k_be, k_bd = jax.random.split(key, 4)
        bound_e = 1.0 / float(din) ** 0.5
        bound_d = 1.0 / float(dout) ** 0.5
        # PyTorch encode.weight has shape (dout, din); decode.weight = encode.weight.T
        w_enc_pt = jax.random.uniform(
            k_w, (dout, din), jnp.float32, minval=-bound_e, maxval=bound_e)
        b_enc = jax.random.uniform(
            k_be, (dout,), jnp.float32, minval=-bound_e, maxval=bound_e)
        b_dec = jax.random.uniform(
            k_bd, (din,), jnp.float32, minval=-bound_d, maxval=bound_d)
        params.append(dict(
            w=w_enc_pt.T.astype(jnp.bfloat16),   # (din, dout), shared by enc & dec
            b_enc=b_enc.reshape(1, dout),        # f32
            b_dec=b_dec.reshape(1, din),         # f32
        ))
    return params


# ---------------------------------------------------------------------------
# Pure-JAX reference with identical numerics (bf16 matmul inputs, f32 accumulate).
# ---------------------------------------------------------------------------
def sdae_forward_ref(params, x):
    h = x.astype(jnp.float32)
    for p in params:
        w = p["w"]
        z = lax.dot_general(h.astype(w.dtype), w, (((1,), (0,)), ((), ())),
                            preferred_element_type=jnp.float32)
        h = jax.nn.sigmoid(z + p["b_enc"])
    latent = h
    r = h
    for i, p in enumerate(reversed(params)):
        if i != 0:
            r = jax.nn.sigmoid(r)
        w = p["w"]
        r = lax.dot_general(r.astype(w.dtype), w, (((1,), (1,)), ((), ())),
                            preferred_element_type=jnp.float32) + p["b_dec"]
    return latent, r


if __name__ == "__main__":
    # SDAEInfo-equivalent config (small, deterministic)
    batch = 2
    input_layer = 32
    hidden_layers = [16]
    latent_layer = 8
    # dropout rate unused at inference (eval-mode identity)
    # TODO(synk): train-mode Dropout (RNG masking) not implemented; inference only.

    key = jax.random.PRNGKey(0)
    key, pkey, xkey = jax.random.split(key, 3)
    params = init_sdae_params(pkey, input_layer, hidden_layers, latent_layer)
    x = jax.random.normal(xkey, (batch, input_layer), dtype=jnp.float32)

    latent, reconstructed = sdae_forward(params, x)
    latent = jax.block_until_ready(latent)
    reconstructed = jax.block_until_ready(reconstructed)

    lat_ref, rec_ref = sdae_forward_ref(params, x)
    assert latent.shape == (batch, latent_layer)
    assert reconstructed.shape == (batch, input_layer)
    assert jnp.allclose(latent, lat_ref, atol=1e-4, rtol=1e-4), \
        float(jnp.max(jnp.abs(latent - lat_ref)))
    assert jnp.allclose(reconstructed, rec_ref, atol=1e-4, rtol=1e-4), \
        float(jnp.max(jnp.abs(reconstructed - rec_ref)))

    print("KERNEL_OK")
</pallas_src>

<mosaic_0001>
module attributes {stable_mosaic.version = 11 : i64} {
  func.func @_sdae_fused_kernel(%arg0: i32, %arg1: memref<8x32xf32, #tpu.memory_space<vmem>>, %arg2: memref<32x16xbf16, #tpu.memory_space<vmem>>, %arg3: memref<16x8xbf16, #tpu.memory_space<vmem>>, %arg4: memref<1x16xf32, #tpu.memory_space<vmem>>, %arg5: memref<1x8xf32, #tpu.memory_space<vmem>>, %arg6: memref<1x32xf32, #tpu.memory_space<vmem>>, %arg7: memref<1x16xf32, #tpu.memory_space<vmem>>, %arg8: memref<8x8xf32, #tpu.memory_space<vmem>>, %arg9: memref<8x32xf32, #tpu.memory_space<vmem>>) attributes {dimension_semantics = [#tpu.dimension_semantics<parallel>], iteration_bounds = array<i64: 1>, scalar_prefetch = 0 : i64, scratch_operands = 0 : i64, tpu.core_type = #tpu.core_type<tc>, window_params = [{transform_indices = @transform_0, window_bounds = array<i64: 8, 32>}, {pipeline_mode = #tpu.pipeline_mode<synchronous>, transform_indices = @transform_1, window_bounds = array<i64: 32, 16>}, {pipeline_mode = #tpu.pipeline_mode<synchronous>, transform_indices = @transform_2, window_bounds = array<i64: 16, 8>}, {pipeline_mode = #tpu.pipeline_mode<synchronous>, transform_indices = @transform_3, window_bounds = array<i64: 1, 16>}, {pipeline_mode = #tpu.pipeline_mode<synchronous>, transform_indices = @transform_4, window_bounds = array<i64: 1, 8>}, {pipeline_mode = #tpu.pipeline_mode<synchronous>, transform_indices = @transform_5, window_bounds = array<i64: 1, 32>}, {pipeline_mode = #tpu.pipeline_mode<synchronous>, transform_indices = @transform_6, window_bounds = array<i64: 1, 16>}, {transform_indices = @transform_7, window_bounds = array<i64: 8, 8>}, {transform_indices = @transform_8, window_bounds = array<i64: 8, 32>}]} {
    %c0 = arith.constant 0 : index
    %c0_0 = arith.constant 0 : index
    %0 = vector.load %arg1[%c0, %c0_0] : memref<8x32xf32, #tpu.memory_space<vmem>>, vector<8x32xf32>
    %c0_1 = arith.constant 0 : index
    %c0_2 = arith.constant 0 : index
    %1 = vector.load %arg2[%c0_1, %c0_2] : memref<32x16xbf16, #tpu.memory_space<vmem>>, vector<32x16xbf16>
    %2 = arith.truncf %0 : vector<8x32xf32> to vector<8x32xbf16>
    %cst = arith.constant dense<0.000000e+00> : vector<8x16xf32>
    %3 = tpu.matmul %2, %1, %cst {dimension_numbers = #tpu.dot_dimension_numbers<[1], [0], [0], [1], [0, 0, 1, 1], [], []>} : vector<8x32xbf16>, vector<32x16xbf16>, vector<8x16xf32> -> vector<8x16xf32>
    %c0_3 = arith.constant 0 : index
    %c0_4 = arith.constant 0 : index
    %4 = vector.load %arg4[%c0_3, %c0_4] : memref<1x16xf32, #tpu.memory_space<vmem>>, vector<1x16xf32>
    %5 = vector.broadcast %4 : vector<1x16xf32> to vector<8x16xf32>
    %6 = arith.addf %3, %5 : vector<8x16xf32>
    %7 = arith.negf %6 : vector<8x16xf32>
    %8 = math.exp %7 : vector<8x16xf32>
    %cst_5 = arith.constant 1.000000e+00 : f32
    %9 = vector.broadcast %cst_5 : f32 to vector<8x16xf32>
    %10 = arith.addf %9, %8 : vector<8x16xf32>
    %11 = arith.divf %9, %10 : vector<8x16xf32>
    %c0_6 = arith.constant 0 : index
    %c0_7 = arith.constant 0 : index
    %12 = vector.load %arg3[%c0_6, %c0_7] : memref<16x8xbf16, #tpu.memory_space<vmem>>, vector<16x8xbf16>
    %13 = arith.truncf %11 : vector<8x16xf32> to vector<8x16xbf16>
    %cst_8 = arith.constant dense<0.000000e+00> : vector<8x8xf32>
    %14 = tpu.matmul %13, %12, %cst_8 {dimension_numbers = #tpu.dot_dimension_numbers<[1], [0], [0], [1], [0, 0, 1, 1], [], []>} : vector<8x16xbf16>, vector<16x8xbf16>, vector<8x8xf32> -> vector<8x8xf32>
    %c0_9 = arith.constant 0 : index
    %c0_10 = arith.constant 0 : index
    %15 = vector.load %arg5[%c0_9, %c0_10] : memref<1x8xf32, #tpu.memory_space<vmem>>, vector<1x8xf32>
    %16 = vector.broadcast %15 : vector<1x8xf32> to vector<8x8xf32>
    %17 = arith.addf %14, %16 : vector<8x8xf32>
    %18 = arith.negf %17 : vector<8x8xf32>
    %19 = math.exp %18 : vector<8x8xf32>
    %cst_11 = arith.constant 1.000000e+00 : f32
    %20 = vector.broadcast %cst_11 : f32 to vector<8x8xf32>
    %21 = arith.addf %20, %19 : vector<8x8xf32>
    %22 = arith.divf %20, %21 : vector<8x8xf32>
    %c0_12 = arith.constant 0 : index
    %c0_13 = arith.constant 0 : index
    %23 = vector.load %arg8[%c0_12, %c0_13] : memref<8x8xf32, #tpu.memory_space<vmem>>, vector<8x8xf32>
    tpu.vector_store %arg8[%c0_12, %c0_13], %22 {strides = array<i32>} : memref<8x8xf32, #tpu.memory_space<vmem>>, vector<8x8xf32>,
    %c0_14 = arith.constant 0 : index
    %c0_15 = arith.constant 0 : index
    %24 = vector.load %arg3[%c0_14, %c0_15] : memref<16x8xbf16, #tpu.memory_space<vmem>>, vector<16x8xbf16>
    %25 = arith.truncf %22 : vector<8x8xf32> to vector<8x8xbf16>
    %cst_16 = arith.constant dense<0.000000e+00> : vector<8x16xf32>
    %26 = tpu.matmul %25, %24, %cst_16 {dimension_numbers = #tpu.dot_dimension_numbers<[1], [1], [0], [0], [0, 0, 1, 0], [], []>} : vector<8x8xbf16>, vector<16x8xbf16>, vector<8x16xf32> -> vector<8x16xf32>
    %c0_17 = arith.constant 0 : index
    %c0_18 = arith.constant 0 : index
    %27 = vector.load %arg7[%c0_17, %c0_18] : memref<1x16xf32, #tpu.memory_space<vmem>>, vector<1x16xf32>
    %28 = vector.broadcast %27 : vector<1x16xf32> to vector<8x16xf32>
    %29 = arith.addf %26, %28 : vector<8x16xf32>
    %30 = arith.negf %29 : vector<8x16xf32>
    %31 = math.exp %30 : vector<8x16xf32>
    %cst_19 = arith.constant 1.000000e+00 : f32
    %32 = vector.broadcast %cst_19 : f32 to vector<8x16xf32>
    %33 = arith.addf %32, %31 : vector<8x16xf32>
    %34 = arith.divf %32, %33 : vector<8x16xf32>
    %c0_20 = arith.constant 0 : index
    %c0_21 = arith.constant 0 : index
    %35 = vector.load %arg2[%c0_20, %c0_21] : memref<32x16xbf16, #tpu.memory_space<vmem>>, vector<32x16xbf16>
    %36 = arith.truncf %34 : vector<8x16xf32> to vector<8x16xbf16>
    %cst_22 = arith.constant dense<0.000000e+00> : vector<8x32xf32>
    %37 = tpu.matmul %36, %35, %cst_22 {dimension_numbers = #tpu.dot_dimension_numbers<[1], [1], [0], [0], [0, 0, 1, 0], [], []>} : vector<8x16xbf16>, vector<32x16xbf16>, vector<8x32xf32> -> vector<8x32xf32>
    %c0_23 = arith.constant 0 : index
    %c0_24 = arith.constant 0 : index
    %38 = vector.load %arg6[%c0_23, %c0_24] : memref<1x32xf32, #tpu.memory_space<vmem>>, vector<1x32xf32>
    %39 = vector.broadcast %38 : vector<1x32xf32> to vector<8x32xf32>
    %40 = arith.addf %37, %39 : vector<8x32xf32>
    %c0_25 = arith.constant 0 : index
    %c0_26 = arith.constant 0 : index
    %41 = vector.load %arg9[%c0_25, %c0_26] : memref<8x32xf32, #tpu.memory_space<vmem>>, vector<8x32xf32>
    tpu.vector_store %arg9[%c0_25, %c0_26], %40 {strides = array<i32>} : memref<8x32xf32, #tpu.memory_space<vmem>>, vector<8x32xf32>,
    return
  }
  func.func @transform_0(%arg0: i32) -> (i32, i32) {
    %c0_i32 = arith.constant 0 : i32
    %c0_i32_0 = arith.constant 0 : i32
    return %arg0, %c0_i32 : i32, i32
  }
  func.func @transform_1(%arg0: i32) -> (i32, i32) {
    %c0_i32 = arith.constant 0 : i32
    %c0_i32_0 = arith.constant 0 : i32
    %c0_i32_1 = arith.constant 0 : i32
    return %c0_i32, %c0_i32_0 : i32, i32
  }
  func.func @transform_2(%arg0: i32) -> (i32, i32) {
    %c0_i32 = arith.constant 0 : i32
    %c0_i32_0 = arith.constant 0 : i32
    %c0_i32_1 = arith.constant 0 : i32
    return %c0_i32, %c0_i32_0 : i32, i32
  }
  func.func @transform_3(%arg0: i32) -> (i32, i32) {
    %c0_i32 = arith.constant 0 : i32
    %c0_i32_0 = arith.constant 0 : i32
    %c0_i32_1 = arith.constant 0 : i32
    return %c0_i32, %c0_i32_0 : i32, i32
  }
  func.func @transform_4(%arg0: i32) -> (i32, i32) {
    %c0_i32 = arith.constant 0 : i32
    %c0_i32_0 = arith.constant 0 : i32
    %c0_i32_1 = arith.constant 0 : i32
    return %c0_i32, %c0_i32_0 : i32, i32
  }
  func.func @transform_5(%arg0: i32) -> (i32, i32) {
    %c0_i32 = arith.constant 0 : i32
    %c0_i32_0 = arith.constant 0 : i32
    %c0_i32_1 = arith.constant 0 : i32
    return %c0_i32, %c0_i32_0 : i32, i32
  }
  func.func @transform_6(%arg0: i32) -> (i32, i32) {
    %c0_i32 = arith.constant 0 : i32
    %c0_i32_0 = arith.constant 0 : i32
    %c0_i32_1 = arith.constant 0 : i32
    return %c0_i32, %c0_i32_0 : i32, i32
  }
  func.func @transform_7(%arg0: i32) -> (i32, i32) {
    %c0_i32 = arith.constant 0 : i32
    %c0_i32_0 = arith.constant 0 : i32
    return %arg0, %c0_i32 : i32, i32
  }
  func.func @transform_8(%arg0: i32) -> (i32, i32) {
    %c0_i32 = arith.constant 0 : i32
    %c0_i32_0 = arith.constant 0 : i32
    return %arg0, %c0_i32 : i32, i32
  }
}

</mosaic_0001>

<bundles_post_ra>
// kernel: tpu_custom_call.1
= control target key start
LH: loop header
LB: loop body
LE: loop exit
PB: predicated region body
PF: predicated region fallthrough
CT: control target
= control target key end

     0   :  { %14 = vsyncpa [#allocation3], 0  ;;  %v462_v1 = vmov 0.0   ;;  %vm463_vm0 = vmmov 0   ;;  %s563_s0 = inlined_call_operand.vmem [shape: f32[8,32], index: 0, kind: input, shape index: {}]   ;;  %s564_s1 = inlined_call_operand.vmem [shape: bf16[32,16], index: 1, kind: input, shape index: {}]   ;;  %s565_s2 = inlined_call_operand.vmem [shape: bf16[16,8], index: 2, kind: input, shape index: {}]   ;;  %s566_s3 = inlined_call_operand.vmem [shape: f32[1,16], index: 3, kind: input, shape index: {}]   ;;  %s567_s4 = inlined_call_operand.vmem [shape: f32[1,8], index: 4, kind: input, shape index: {}]   ;;  %s568_s5 = inlined_call_operand.vmem [shape: f32[1,32], index: 5, kind: input, shape index: {}]   ;;  %s569_s6 = inlined_call_operand.vmem [shape: f32[1,16], index: 6, kind: input, shape index: {}]   ;;  %s570_s7 = inlined_call_operand.hbm [shape: f32[8,8], index: 7, kind: output, shape index: {0}]   ;;  %s571_s8 = inlined_call_operand.hbm [shape: f32[8,32], index: 8, kind: output, shape index: {1}]  }
   0x1   :  { %v400_v0 = vld [vmem:[%s564_s1 + $0x8] sm:$0xff]   ;;  %368 = vmatprep.subr.bf16.mxu0 %v462_v1  ;;  %376 = vmatprep.subr.bf16.mxu1 %v462_v1  ;;  %v401_v2 = vld [vmem:[%s564_s1] sm:$0xff]  }
   0x2   :  { %369 = vmatpush3.bf16.msra.mxu0 %v400_v0  ;;  %372 = vmatprep.mubr.msk.bf16.mxu0 %vm463_vm0, %v462_v1  ;;  %v31_v3 = vld [vmem:[%s563_s0] sm:$0xff] }
   0x3   :  { %370 = vmatprep.subr.bf16.mxu0 %v462_v1  ;;  %378 = vmatprep.mubr.msk.bf16.mxu1 %vm463_vm0, %v462_v1  ;;  %v36_v4 = vpack.c.bf16 %v31_v3, %v31_v3 }
   0x4   :  { %15 = vsyncpa [#allocation5], 0  ;;  %vm56_vm1 = vcmask 261120   ;;  %v402_v5 = vld [vmem:[%s565_s2] sm:$0xff]   ;;  %vm122_vm2 = vcmask 130048   ;;  %vm172_vm3 = vcmask 64512  }
   0x5   :  { %377 = vmatpush3.bf16.msra.mxu1 %v402_v5  ;;  %v341_v6 = vld [vmem:[%s566_s3] ss:$0 sm:$0xff]  ;;  %v404_v30 = vld [vmem:[%s564_s1 + $0x8] sm:$0xff]  }
   0x6   :  { %371 = vmatpush3.bf16.msra.mxu0 %v401_v2  ;;  %382 = vmatprep.subr.bf16.mxu1 %v462_v1  ;;  %v403_v17 = vld [vmem:[%s565_s2] sm:$0xff]   ;;  %v270_v31 = vsel %vm122_vm2, %v404_v30, 0 }
   0x7   :  { %388 = vmatprep.subr.bf16.mxu0 %v462_v1  ;;  %v193_v18 = vsel %vm172_vm3, %v403_v17, 0  ;;  %v346_v19 = vld [vmem:[%s567_s4] ss:$0 sm:$0xff] }
   0x8   :  { %v405_v32 = vld [vmem:[%s564_s1] sm:$0xff]   ;;  %s464_s1 = smov [#allocation2]  }
   0x9   :  { %373 = vmatmul.mubr.msk.bf16.vlgmr.msra.gmra.mxu0 %vm56_vm1, %v36_v4  ;;  %v267_v33 = vsel %vm122_vm2, %v405_v32, 0  ;;  %v350_v34 = vld [vmem:[%s569_s6] ss:$0 sm:$0xff]  ;;  %s319_s21 = sshll.u32 %s464_s1, 4  ;;  %s320_s21 = int_to_ptr.vmem [resolvable:$true] %s319_s21 }
   0xa   :  { %392 = vmatprep.mubr.msk.bf16.mxu0 %vm463_vm0, %v462_v1  ;;  %389 = vmatpush3.bf16.xpose.msra.mxu0 %v270_v31  ;;  %s418_s22 = scalar_lea.vmem %s320_s21, 128  ;;  %p423_p1 = scmp.lt.s32.totalorder %s320_s21, %s320_s21 }
   0xb   :  { %390 = vmatprep.subr.bf16.mxu0 %v462_v1  ;;  %p419_p0 = scmp.ne.s32.totalorder %s320_s21, %s418_s22  ;;  %p424_p2 = scmp.lt.s32.totalorder %s418_s22, %s418_s22 }
   0xd   :  { %p425_p3 = por %p424_p2, %p423_p1 }
   0xf   :  { %p426_p4 = pnand %p425_p3, %p419_p0 }
  0x12   :  { %391 = vmatpush3.bf16.xpose.msra.mxu0 %v267_v33 }
  0xc9   :  { %v94_v7 = vpop.f32.mrf.mxu0 }
  0xca   :  { %v95_v8 = vadd.f32 %v341_v6, %v94_v7 }
  0xcb   :  { %v374_v9 = vpop.f32.mrf.mxu0 }
  0xcc   :  { %v345_v10 = vmul.f32 -1.442695, %v95_v8 }
  0xcd   :  { %v97_v11 = vpop.f32.mrf.mxu0 }
  0xce   :  { %406 = vpow2.f32 %v345_v10 }
  0xcf   :  { %v375_v12 = vpop.f32.mrf.mxu0 }
  0xdb   :  { %v407_v13 = vpop.eup %406 }
  0xdc   :  { %v103_v14 = vadd.f32 1.0, %v407_v13 }
  0xde   :  { %408 = vrcp.f32 %v103_v14 }
  0xeb   :  { %v409_v15 = vpop.eup %408 }
  0xec   :  { %v108_v16 = vpack.c.bf16 %v409_v15, %v409_v15 }
  0xee   :  { %379 = vmatmul.mubr.msk.bf16.vlgmr.msra.gmra.mxu1 %vm122_vm2, %v108_v16 }
  0xef   :  { %384 = vmatprep.mubr.msk.bf16.mxu1 %vm463_vm0, %v462_v1  ;;  %383 = vmatpush3.bf16.xpose.msra.mxu1 %v193_v18 }
 0x1ae   :  { %v160_v20 = vpop.f32.mrf.mxu1 }
 0x1af   :  { %v161_v21 = vadd.f32 %v346_v19, %v160_v20 }
 0x1b0   :  { %v380_v22 = vpop.f32.mrf.mxu1 }
 0x1b1   :  { %v349_v23 = vmul.f32 -1.442695, %v161_v21 }
 0x1b2   :  { %v163_v24 = vpop.f32.mrf.mxu1 }
 0x1b3   :  { %410 = vpow2.f32 %v349_v23 }
 0x1b4   :  { %v381_v25 = vpop.f32.mrf.mxu1 }
 0x1c0   :  { %v411_v26 = vpop.eup %410 }
 0x1c1   :  { %v169_v27 = vadd.f32 1.0, %v411_v26 }
 0x1c3   :  { %412 = vrcp.f32 %v169_v27 }
 0x1d0   :  { %v413_v28 = vpop.eup %412 }
 0x1d1   :  { %173 = vst.msk [vmem:[#allocation2] sm:$0xff] %vm172_vm3, %v413_v28  ;;  %v176_v29 = vpack.c.bf16 %v413_v28, %v413_v28 }
 0x1d3   :  { %385 = vmatmul.mubr.msk.bf16.vlgmr.msra.gmra.mxu1 %vm172_vm3, %v176_v29 }
 0x293   :  { %v229_v35 = vpop.f32.mrf.mxu1 }
 0x294   :  { %v230_v36 = vadd.f32 %v350_v34, %v229_v35 }
 0x295   :  { %v386_v37 = vpop.f32.mrf.mxu1 }
 0x296   :  { %v353_v38 = vmul.f32 -1.442695, %v230_v36 }
 0x297   :  { %v232_v39 = vpop.f32.mrf.mxu1 }
 0x298   :  { %414 = vpow2.f32 %v353_v38 }
 0x299   :  { %v387_v40 = vpop.f32.mrf.mxu1 }
 0x2a5   :  { %v415_v41 = vpop.eup %414 }
 0x2a6   :  { %v238_v42 = vadd.f32 1.0, %v415_v41 }
 0x2a8   :  { %416 = vrcp.f32 %v238_v42 }
 0x2b5   :  { %v417_v43 = vpop.eup %416 }
 0x2b6   :  { %v245_v44 = vpack.c.bf16 %v417_v43, %v417_v43 }
 0x2b8   :  { %393 = vmatmul.mubr.msk.bf16.vlgmr.msra.gmra.mxu0 %vm122_vm2, %v245_v44 }
 0x2b9   :  { %429 = shalt.err (!%p426_p4)
}
 0x2ba   :  { %322 = dma.vmem_to_hbm [thread:$0]  %s320_s21, 128, %s570_s7, [#allocation3]   ;;  %v354_v45 = vld [vmem:[%s568_s5] ss:$0 sm:$0xff] }
 0x2bb   :  { %s465_s26 = smov [#allocation4]  }
 0x2bc   :  { %s329_s27 = sshll.u32 %s465_s26, 4  ;;  %s330_s27 = int_to_ptr.vmem [resolvable:$true] %s329_s27 }
 0x2bd   :  { %s438_s28 = scalar_lea.vmem %s330_s27, 128  ;;  %p443_p6 = scmp.lt.s32.totalorder %s330_s27, %s330_s27 }
 0x2be   :  { %p439_p5 = scmp.ne.s32.totalorder %s330_s27, %s438_s28  ;;  %p444_p7 = scmp.lt.s32.totalorder %s438_s28, %s438_s28 }
 0x2c0   :  { %p445_p8 = por %p444_p7, %p443_p6 }
 0x2c2   :  { %p446_p9 = pnand %p445_p8, %p439_p5 }
 0x378   :  { %v306_v46 = vpop.f32.mrf.mxu0 }
 0x379   :  { %v307_v47 = vadd.f32 %v354_v45, %v306_v46 }
 0x37a   :  { %v394_v48 = vpop.f32.mrf.mxu0 }
 0x37b   :  { %312 = vst.msk [vmem:[#allocation4] sm:$0xff] %vm56_vm1, %v307_v47 }
 0x37c   :  { %v309_v49 = vpop.f32.mrf.mxu0 }
 0x37d   :  { %449 = shalt.err (!%p446_p9)
}
 0x37e   :  { %332 = dma.vmem_to_hbm [thread:$0]  %s330_s27, 128, %s571_s8, [#allocation5]   ;;  %v395_v50 = vpop.f32.mrf.mxu0 }
 0x37f   :  { %458 = dma.done.wait [#allocation3], 128  }
 0x380   :  { %459 = vsyncadd [#allocation3], 4294967168 }
 0x381   :  { %460 = dma.done.wait [#allocation5], 128  }
 0x382   :  { %461 = vsyncadd [#allocation5], 4294967168 }
 0x383   :  { %339 = vsyncpa [#allocation3], 1 }
 0x384   :  { %340 = vsyncpa [#allocation5], 1 }

</bundles_post_ra>
